<compile_context>
chip_gen: v7x
topology: tpu7x:2x2x1
jax: 0.10.0
libtpu: 0.0.40
codegen_flags: <defaults>
</compile_context>

<pallas_src>
import functools

import jax
import jax.numpy as jnp
from jax.experimental import pallas as pl
from jax.experimental.pallas import tpu as pltpu


def _round_up(x, m):
    return ((x + m - 1) // m) * m


def _pad_k(k):
    """Shared K-padding rule (prepare_params pads W with it; forward reads the
    padded K back off the weight shape)."""
    k_pad = _round_up(k, 128)
    if k_pad > 512:
        k_pad = _round_up(k_pad, 512)   # guarantees a tk >= 512 divisor exists
    return k_pad


def _choose_tk(k_pad):
    for cand in (2048, 1024, 512, 256, 128):
        if cand <= k_pad and k_pad % cand == 0:
            return cand
    return k_pad


def _linear_kernel(x_ref, w_ref, b_ref, o_ref, acc_ref):
    # x_ref: (tm, tk)  w_ref: (tk, tn)  b_ref: (1, tn) f32
    # o_ref: (tm, tn)  acc_ref: (tm, tn) f32 VMEM scratch
    k = pl.program_id(2)

    @pl.when(k == 0)
    def _():
        acc_ref[...] = jnp.zeros_like(acc_ref)

    # Canonical (M,K) x (K,N) contraction: MXU gets its natural stationary
    # layout (lanes = N), no per-K-step weight transpose.
    acc_ref[...] += jnp.dot(x_ref[...], w_ref[...],
                            preferred_element_type=jnp.float32)

    @pl.when(k == pl.num_programs(2) - 1)
    def _():
        o_ref[...] = (acc_ref[...] + b_ref[...]).astype(o_ref.dtype)


def prepare_params(weight, bias, *, compute_dtype=jnp.bfloat16):
    """One-time, offline parameter preparation (outside the hot forward).

    weight: (n_outputs, n_inputs)  PyTorch (N, K) convention.
    bias:   (n_outputs,)
    Returns:
      w_kn:  (K_pad, N_pad) in compute_dtype  -- pre-transposed + padded + cast.
      b_pad: (1, N_pad) float32.
    """
    n, k = weight.shape
    n_pad = _round_up(n, 128)               # lane-dense output stores
    k_pad = _pad_k(k)
    w_kn = jnp.pad(weight, ((0, n_pad - n), (0, k_pad - k))).T.astype(compute_dtype)
    b_pad = jnp.pad(bias, (0, n_pad - n)).astype(jnp.float32).reshape(1, n_pad)
    return jnp.asarray(w_kn), b_pad


@functools.partial(jax.jit, static_argnames=("n_outputs",))
def linearnet_forward(x, w_kn, b_pad, n_outputs):
    """Forward of Linearnet: flatten all non-batch dims, then y = x @ W.T + b.

    x:      (B, ...) with prod(trailing) == n_inputs
    w_kn:   (K_pad, N_pad) from prepare_params (compute dtype, e.g. bf16)
    b_pad:  (1, N_pad) f32 from prepare_params
    returns (B, n_outputs) in x.dtype
    """
    batch = x.shape[0]
    x2d = x.reshape(batch, -1)                       # x.view(-1, num_flat_features)
    m, k = x2d.shape
    k_pad, n_pad = w_kn.shape

    compute_dtype = w_kn.dtype
    out_dtype = x.dtype
    cbytes = jnp.dtype(compute_dtype).itemsize
    obytes = jnp.dtype(out_dtype).itemsize

    # --- M padding: respect sub-32-bit sublane packing (bf16: 16, int8/fp8: 32).
    sub = 8 * max(1, 4 // cbytes)
    m_pad = _round_up(m, sub)
    if m_pad >= 512:
        m_pad = _round_up(m_pad, 256)
        tm = 256
    elif m_pad >= 128:
        m_pad = _round_up(m_pad, 128)
        tm = 128
    else:
        tm = m_pad

    # --- N tile: prefer 256-multiples (fills the 2x256^2 MXU on v6e/v7x).
    tn = 128
    for cand in (512, 256, 128):
        if n_pad % cand == 0:
            tn = cand
            break

    # --- K tile: largest that divides K_pad, shrunk only if the VMEM budget says so.
    tk = _choose_tk(k_pad)

    def vmem_need(tk_):
        # double-buffered inputs + double-buffered output + f32 accumulator
        return (2 * (tm * tk_ + tk_ * tn) * cbytes
                + 2 * tm * tn * obytes
                + tm * tn * 4)

    while tk > 128 and vmem_need(tk) > (24 << 20):
        tk //= 2                                     # stays a divisor of k_pad

    x2d = jnp.pad(x2d, ((0, m_pad - m), (0, k_pad - k))).astype(compute_dtype)

    grid = (m_pad // tm, n_pad // tn, k_pad // tk)
    grid_m, grid_n, grid_k = grid

    # Weight stream: triple-buffer when the per-K-step compute is short (small M)
    # and there are enough K steps for it to matter.
    w_spec_kwargs = {}
    if tm <= 128 and grid_k >= 3:
        w_spec_kwargs["pipeline_mode"] = pl.Buffered(3)
    w_spec = pl.BlockSpec((tk, tn), lambda i, j, kk: (kk, j), **w_spec_kwargs)

    cost = pl.CostEstimate(
        flops=2 * m_pad * k_pad * n_pad,
        transcendentals=0,
        bytes_accessed=(grid_n * m_pad * k_pad * cbytes     # x re-streamed per N tile
                        + grid_m * k_pad * n_pad * cbytes   # W re-streamed per M tile
                        + m_pad * n_pad * obytes            # output
                        + n_pad * 4),                       # bias
    )

    vmem_limit = int(min(max(2 * vmem_need(tk), 32 << 20), 48 << 20))

    out = pl.pallas_call(
        _linear_kernel,
        out_shape=jax.ShapeDtypeStruct((m_pad, n_pad), out_dtype),
        grid_spec=pltpu.PrefetchScalarGridSpec(
            num_scalar_prefetch=0,
            grid=grid,
            in_specs=[
                pl.BlockSpec((tm, tk), lambda i, j, kk: (i, kk)),   # x tile
                w_spec,                                             # W tile (K, N)
                pl.BlockSpec((1, tn), lambda i, j, kk: (0, j)),     # bias tile
            ],
            out_specs=pl.BlockSpec((tm, tn), lambda i, j, kk: (i, j)),
            scratch_shapes=[pltpu.VMEM((tm, tn), jnp.float32)],
        ),
        compiler_params=pltpu.CompilerParams(
            dimension_semantics=("parallel", "parallel", "arbitrary"),
            vmem_limit_bytes=vmem_limit,
        ),
        cost_estimate=cost,
    )(x2d, w_kn, b_pad)

    return out[:m, :n_outputs]


def init_linearnet_params(key, n_inputs, n_outputs, dtype=jnp.float32):
    """Matches the PyTorch module: weight xavier_uniform_, bias default
    nn.Linear uniform(-1/sqrt(fan_in), 1/sqrt(fan_in))."""
    kw, kb = jax.random.split(key)
    a = jnp.sqrt(6.0 / (n_inputs + n_outputs))
    weight = jax.random.uniform(kw, (n_outputs, n_inputs), dtype, minval=-a, maxval=a)
    bound = 1.0 / jnp.sqrt(jnp.asarray(n_inputs, dtype))
    bias = jax.random.uniform(kb, (n_outputs,), dtype, minval=-bound, maxval=bound)
    return weight, bias


if __name__ == "__main__":
    key = jax.random.PRNGKey(0)
    k_x, k_p = jax.random.split(key)

    # Small shapes consistent with the module: flatten (4,16,16) -> 1024 features.
    x = jax.random.normal(k_x, (2, 4, 16, 16), dtype=jnp.float32)
    n_inputs = 4 * 16 * 16
    n_outputs = 32

    weight, bias = init_linearnet_params(k_p, n_inputs, n_outputs)

    # One-time parameter preparation (pad + transpose to (K,N) + bf16 cast).
    w_kn, b_pad = prepare_params(weight, bias)

    y = linearnet_forward(x, w_kn, b_pad, n_outputs)
    jax.block_until_ready(y)

    x2d = x.reshape(x.shape[0], -1)
    # Bit-matched reference: bf16-rounded inputs, f32 accumulation (what the kernel does).
    y_ref_bf16 = (x2d.astype(jnp.bfloat16).astype(jnp.float32)
                  @ weight.astype(jnp.bfloat16).astype(jnp.float32).T) + bias
    # Exact f32 reference (looser tolerance covering bf16 input rounding).
    y_ref_f32 = x2d @ weight.T + bias

    assert y.shape == (2, n_outputs), y.shape
    assert jnp.allclose(y, y_ref_bf16, atol=2e-3, rtol=2e-3), \
        float(jnp.max(jnp.abs(y - y_ref_bf16)))
    assert jnp.allclose(y, y_ref_f32, atol=5e-2, rtol=5e-2), \
        float(jnp.max(jnp.abs(y - y_ref_f32)))

    print("KERNEL_OK")
</pallas_src>

<mosaic_0001>
module attributes {stable_mosaic.version = 11 : i64} {
  func.func @_linear_kernel(%arg0: i32, %arg1: i32, %arg2: i32, %arg3: memref<16x1024xbf16, #tpu.memory_space<vmem>>, %arg4: memref<1024x128xbf16, #tpu.memory_space<vmem>>, %arg5: memref<1x128xf32, #tpu.memory_space<vmem>>, %arg6: memref<16x128xf32, #tpu.memory_space<vmem>>, %arg7: memref<16x128xf32, #tpu.memory_space<vmem>>) attributes {dimension_semantics = [#tpu.dimension_semantics<parallel>, #tpu.dimension_semantics<parallel>, #tpu.dimension_semantics<arbitrary>], iteration_bounds = array<i64: 1, 1, 1>, scalar_prefetch = 0 : i64, scratch_operands = 1 : i64, tpu.core_type = #tpu.core_type<tc>, window_params = [{transform_indices = @transform_0, window_bounds = array<i64: 16, 1024>}, {transform_indices = @transform_1, window_bounds = array<i64: 1024, 128>}, {transform_indices = @transform_2, window_bounds = array<i64: 1, 128>}, {transform_indices = @transform_3, window_bounds = array<i64: 16, 128>}]} {
    %c0_i32 = arith.constant 0 : i32
    %0 = arith.cmpi eq, %arg2, %c0_i32 : i32
    %1 = arith.extui %0 : i1 to i32
    %c0_i32_0 = arith.constant 0 : i32
    %2 = arith.cmpi ne, %1, %c0_i32_0 : i32
    scf.if %2 {
      %cst_10 = arith.constant 0.000000e+00 : f32
      %12 = vector.broadcast %cst_10 : f32 to vector<16x128xf32>
      %c0_11 = arith.constant 0 : index
      %c0_12 = arith.constant 0 : index
      %13 = vector.load %arg7[%c0_11, %c0_12] : memref<16x128xf32, #tpu.memory_space<vmem>>, vector<16x128xf32>
      tpu.vector_store %arg7[%c0_11, %c0_12], %12 {strides = array<i32>} : memref<16x128xf32, #tpu.memory_space<vmem>>, vector<16x128xf32>,
    } else {
    }
    %c0 = arith.constant 0 : index
    %c0_1 = arith.constant 0 : index
    %3 = vector.load %arg7[%c0, %c0_1] : memref<16x128xf32, #tpu.memory_space<vmem>>, vector<16x128xf32>
    %c0_2 = arith.constant 0 : index
    %c0_3 = arith.constant 0 : index
    %4 = vector.load %arg3[%c0_2, %c0_3] : memref<16x1024xbf16, #tpu.memory_space<vmem>>, vector<16x1024xbf16>
    %c0_4 = arith.constant 0 : index
    %c0_5 = arith.constant 0 : index
    %5 = vector.load %arg4[%c0_4, %c0_5] : memref<1024x128xbf16, #tpu.memory_space<vmem>>, vector<1024x128xbf16>
    %cst = arith.constant dense<0.000000e+00> : vector<16x128xf32>
    %6 = tpu.matmul %4, %5, %cst {dimension_numbers = #tpu.dot_dimension_numbers<[1], [0], [0], [1], [0, 0, 1, 1], [], []>} : vector<16x1024xbf16>, vector<1024x128xbf16>, vector<16x128xf32> -> vector<16x128xf32>
    %7 = arith.addf %3, %6 : vector<16x128xf32>
    %c0_6 = arith.constant 0 : index
    %c0_7 = arith.constant 0 : index
    %8 = vector.load %arg7[%c0_6, %c0_7] : memref<16x128xf32, #tpu.memory_space<vmem>>, vector<16x128xf32>
    tpu.vector_store %arg7[%c0_6, %c0_7], %7 {strides = array<i32>} : memref<16x128xf32, #tpu.memory_space<vmem>>, vector<16x128xf32>,
    %c0_i32_8 = arith.constant 0 : i32
    %9 = arith.cmpi eq, %arg2, %c0_i32_8 : i32
    %10 = arith.extui %9 : i1 to i32
    %c0_i32_9 = arith.constant 0 : i32
    %11 = arith.cmpi ne, %10, %c0_i32_9 : i32
    scf.if %11 {
      %c0_10 = arith.constant 0 : index
      %c0_11 = arith.constant 0 : index
      %12 = vector.load %arg7[%c0_10, %c0_11] : memref<16x128xf32, #tpu.memory_space<vmem>>, vector<16x128xf32>
      %c0_12 = arith.constant 0 : index
      %c0_13 = arith.constant 0 : index
      %13 = vector.load %arg5[%c0_12, %c0_13] : memref<1x128xf32, #tpu.memory_space<vmem>>, vector<1x128xf32>
      %14 = vector.broadcast %13 : vector<1x128xf32> to vector<16x128xf32>
      %15 = arith.addf %12, %14 : vector<16x128xf32>
      %c0_14 = arith.constant 0 : index
      %c0_15 = arith.constant 0 : index
      %16 = vector.load %arg6[%c0_14, %c0_15] : memref<16x128xf32, #tpu.memory_space<vmem>>, vector<16x128xf32>
      tpu.vector_store %arg6[%c0_14, %c0_15], %15 {strides = array<i32>} : memref<16x128xf32, #tpu.memory_space<vmem>>, vector<16x128xf32>,
    } else {
    }
    return
  }
  func.func @transform_0(%arg0: i32, %arg1: i32, %arg2: i32) -> (i32, i32) {
    %c0_i32 = arith.constant 0 : i32
    return %arg0, %arg2 : i32, i32
  }
  func.func @transform_1(%arg0: i32, %arg1: i32, %arg2: i32) -> (i32, i32) {
    %c0_i32 = arith.constant 0 : i32
    return %arg2, %arg1 : i32, i32
  }
  func.func @transform_2(%arg0: i32, %arg1: i32, %arg2: i32) -> (i32, i32) {
    %c0_i32 = arith.constant 0 : i32
    %c0_i32_0 = arith.constant 0 : i32
    return %c0_i32, %arg1 : i32, i32
  }
  func.func @transform_3(%arg0: i32, %arg1: i32, %arg2: i32) -> (i32, i32) {
    %c0_i32 = arith.constant 0 : i32
    return %arg0, %arg1 : i32, i32
  }
}

</mosaic_0001>

<bundles_post_ra>
// kernel: linearnet_forward.1
= control target key start
LH: loop header
LB: loop body
LE: loop exit
PB: predicated region body
PF: predicated region fallthrough
CT: control target
= control target key end

     0   :  { %8 = vsyncpa [#allocation4], 0  ;;  %s1038_s12 = smov [#allocation3]   ;;  %s1106_s0 = inlined_call_operand.vmem [shape: bf16[16,1024], index: 0, kind: input, shape index: {}]   ;;  %s1107_s1 = inlined_call_operand.hbm [shape: bf16[1024,128], index: 1, kind: input, shape index: {}]   ;;  %s1108_s2 = inlined_call_operand.vmem [shape: f32[1,128], index: 2, kind: input, shape index: {}]   ;;  %s1109_s3 = inlined_call_operand.vmem [shape: f32[16,128], index: 3, kind: output, shape index: {}]  }
   0x1   :  { %s16_s13 = sshll.u32 %s1038_s12, 4  ;;  %s1014_s16 = scalar_lea.hbm %s1107_s1, 8192  ;;  %s17_s13 = int_to_ptr.vmem [resolvable:$true] %s16_s13 }
   0x2   :  { %p1015_p0 = scmp.ne.s32.totalorder %s1107_s1, %s1014_s16  ;;  %p1018_p1 = scmp.lt.u32.totalorder %s1014_s16, %s1107_s1 }
   0x4   :  { %p1020_p2 = pnand %p1018_p1, %p1015_p0 }
   0x6   :  { %1023 = shalt.err (!%p1020_p2)
}
   0x7   :  { %s1024_s21 = scalar_lea.vmem %s17_s13, 8192  ;;  %p1029_p4 = scmp.lt.s32.totalorder %s17_s13, %s17_s13 }
   0x8   :  { %p1025_p3 = scmp.ne.s32.totalorder %s17_s13, %s1024_s21  ;;  %p1030_p5 = scmp.lt.s32.totalorder %s1024_s21, %s1024_s21 }
   0xa   :  { %p1031_p6 = por %p1030_p5, %p1029_p4 }
   0xc   :  { %p1032_p7 = pnand %p1031_p6, %p1025_p3 }
   0xe   :  { %1035 = shalt.err (!%p1032_p7)
}
   0xf   :  { %s1039_s22 = smov 64   ;;  %s1040_s23 = smov 4  }
  0x10   :  { %22 = dma.hbm_to_vmem [thread:$0]  %s1107_s1, 8192, %s17_s13, [#allocation4], %s1039_s22, %s1039_s22, %s1040_s23  }
  0x11   :  { %1036 = dma.done.wait [#allocation4], 8192  }
  0x12   :  { %1037 = vsyncadd [#allocation4], 4294959104  ;;  %v950_v0 = vld [vmem:[#allocation3 + $0x40] sm:$0xff]   ;;  %v954_v4 = vld [vmem:[#allocation3 + $0x48] sm:$0xff]  }
  0x13   :  { %v951_v1 = vld [vmem:[#allocation3 + $0xc0] sm:$0xff]   ;;  %859 = vmatprep.subr.bf16.mxu0 %v950_v0  ;;  %v955_v5 = vld [vmem:[#allocation3 + $0xc8] sm:$0xff]   ;;  %v958_v8 = vld [vmem:[#allocation3 + $0x50] sm:$0xff]  }
  0x14   :  { %v952_v2 = vld [vmem:[#allocation3] sm:$0xff]   ;;  %881 = vmatprep.subr.bf16.mxu1 %v951_v1  ;;  %v956_v6 = vld [vmem:[#allocation3 + $0x8] sm:$0xff]   ;;  %v959_v9 = vld [vmem:[#allocation3 + $0xd0] sm:$0xff]  }
  0x15   :  { %v953_v3 = vld [vmem:[#allocation3 + $0x80] sm:$0xff]   ;;  %860 = vmatpush3.bf16.msra.mxu0 %v952_v2  ;;  %v957_v7 = vld [vmem:[#allocation3 + $0x88] sm:$0xff]   ;;  %v960_v10 = vld [vmem:[#allocation3 + $0x10] sm:$0xff]  }
  0x16   :  { %882 = vmatpush3.bf16.msra.mxu1 %v953_v3  ;;  %861 = vmatprep.subr.bf16.mxu0 %v954_v4  ;;  %v961_v11 = vld [vmem:[#allocation3 + $0x90] sm:$0xff]   ;;  %v962_v12 = vld [vmem:[#allocation3 + $0x58] sm:$0xff]   ;;  %v966_v16 = vld [vmem:[#allocation3 + $0x60] sm:$0xff]  }
  0x17   :  { %883 = vmatprep.subr.bf16.mxu1 %v955_v5  ;;  %v963_v13 = vld [vmem:[#allocation3 + $0xd8] sm:$0xff]   ;;  %v967_v17 = vld [vmem:[#allocation3 + $0xe0] sm:$0xff]   ;;  %v970_v20 = vld [vmem:[#allocation3 + $0x68] sm:$0xff]  }
  0x18   :  { %v964_v14 = vld [vmem:[#allocation3 + $0x18] sm:$0xff]   ;;  %v968_v18 = vld [vmem:[#allocation3 + $0x20] sm:$0xff]   ;;  %v971_v21 = vld [vmem:[#allocation3 + $0xe8] sm:$0xff]  }
  0x19   :  { %862 = vmatpush3.bf16.msra.mxu0 %v956_v6  ;;  %v965_v15 = vld [vmem:[#allocation3 + $0x98] sm:$0xff]   ;;  %v969_v19 = vld [vmem:[#allocation3 + $0xa0] sm:$0xff]   ;;  %v972_v22 = vld [vmem:[#allocation3 + $0x28] sm:$0xff]  }
  0x1a   :  { %884 = vmatpush3.bf16.msra.mxu1 %v957_v7  ;;  %863 = vmatprep.subr.bf16.mxu0 %v958_v8  ;;  %v973_v23 = vld [vmem:[#allocation3 + $0xa8] sm:$0xff]   ;;  %v974_v24 = vld [vmem:[#allocation3 + $0x70] sm:$0xff]   ;;  %v978_v28 = vld [vmem:[#allocation3 + $0x78] sm:$0xff]  }
  0x1b   :  { %885 = vmatprep.subr.bf16.mxu1 %v959_v9  ;;  %v975_v25 = vld [vmem:[#allocation3 + $0xf0] sm:$0xff]   ;;  %v979_v29 = vld [vmem:[#allocation3 + $0xf8] sm:$0xff]   ;;  %v37_v32 = vld [vmem:[%s1106_s0] sm:$0xff] }
  0x1c   :  { %v976_v26 = vld [vmem:[#allocation3 + $0x30] sm:$0xff]   ;;  %v980_v30 = vld [vmem:[#allocation3 + $0x38] sm:$0xff]   ;;  %v41_v33 = vld [vmem:[%s1106_s0 + $0x20] sm:$0xff] }
  0x1d   :  { %864 = vmatpush3.bf16.msra.mxu0 %v960_v10  ;;  %v977_v27 = vld [vmem:[#allocation3 + $0xb0] sm:$0xff]   ;;  %v981_v31 = vld [vmem:[#allocation3 + $0xb8] sm:$0xff]   ;;  %v38_v34 = vld [vmem:[%s1106_s0 + $0x8] sm:$0xff]  ;;  %v786_v35 = vcombine.low %v37_v32, %v41_v33  ;;  %v787_v36 = vcombine.high %v37_v32, %v41_v33 }
  0x1e   :  { %886 = vmatpush3.bf16.msra.mxu1 %v961_v11  ;;  %865 = vmatprep.subr.bf16.mxu0 %v962_v12  ;;  %v42_v37 = vld [vmem:[%s1106_s0 + $0x28] sm:$0xff]  ;;  %v982_v40 = vld [vmem:[#allocation3 + $0x140] sm:$0xff]   ;;  %v990_v48 = vld [vmem:[#allocation3 + $0x150] sm:$0xff]  }
  0x1f   :  { %887 = vmatprep.subr.bf16.mxu1 %v963_v13  ;;  %v788_v38 = vcombine.low %v38_v34, %v42_v37  ;;  %v789_v39 = vcombine.high %v38_v34, %v42_v37  ;;  %629 = vmatprep.mubr.bf16.mxu0 %v787_v36  ;;  %v983_v41 = vld [vmem:[#allocation3 + $0x1c0] sm:$0xff]   ;;  %v986_v44 = vld [vmem:[#allocation3 + $0x148] sm:$0xff]   ;;  %v991_v49 = vld [vmem:[#allocation3 + $0x1d0] sm:$0xff]  }
  0x20   :  { %v984_v42 = vld [vmem:[#allocation3 + $0x100] sm:$0xff]   ;;  %v987_v45 = vld [vmem:[#allocation3 + $0x1c8] sm:$0xff]   ;;  %v992_v50 = vld [vmem:[#allocation3 + $0x110] sm:$0xff]  }
  0x21   :  { %866 = vmatpush3.bf16.msra.mxu0 %v964_v14  ;;  %670 = vmatprep.mubr.bf16.mxu1 %v789_v39  ;;  %v985_v43 = vld [vmem:[#allocation3 + $0x180] sm:$0xff]   ;;  %v988_v46 = vld [vmem:[#allocation3 + $0x108] sm:$0xff]   ;;  %v993_v51 = vld [vmem:[#allocation3 + $0x190] sm:$0xff]  }
  0x22   :  { %888 = vmatpush3.bf16.msra.mxu1 %v965_v15  ;;  %867 = vmatprep.subr.bf16.mxu0 %v966_v16  ;;  %v989_v47 = vld [vmem:[#allocation3 + $0x188] sm:$0xff]   ;;  %v994_v52 = vld [vmem:[#allocation3 + $0x158] sm:$0xff]   ;;  %v998_v56 = vld [vmem:[#allocation3 + $0x160] sm:$0xff]  }
  0x23   :  { %889 = vmatprep.subr.bf16.mxu1 %v967_v17  ;;  %v995_v53 = vld [vmem:[#allocation3 + $0x1d8] sm:$0xff]   ;;  %v999_v57 = vld [vmem:[#allocation3 + $0x1e0] sm:$0xff]   ;;  %v1002_v60 = vld [vmem:[#allocation3 + $0x168] sm:$0xff]  }
  0x24   :  { %v996_v54 = vld [vmem:[#allocation3 + $0x118] sm:$0xff]   ;;  %v1000_v58 = vld [vmem:[#allocation3 + $0x120] sm:$0xff]   ;;  %v1003_v61 = vld [vmem:[#allocation3 + $0x1e8] sm:$0xff]  }
  0x25   :  { %868 = vmatpush3.bf16.msra.mxu0 %v968_v18  ;;  %v997_v55 = vld [vmem:[#allocation3 + $0x198] sm:$0xff]   ;;  %v1001_v59 = vld [vmem:[#allocation3 + $0x1a0] sm:$0xff]   ;;  %v1004_v62 = vld [vmem:[#allocation3 + $0x128] sm:$0xff]  }
  0x26   :  { %890 = vmatpush3.bf16.msra.mxu1 %v969_v19  ;;  %869 = vmatprep.subr.bf16.mxu0 %v970_v20  ;;  %v1005_v63 = vld [vmem:[#allocation3 + $0x1a8] sm:$0xff]   ;;  %v1006_v0 = vld [vmem:[#allocation3 + $0x170] sm:$0xff]   ;;  %v1010_v4 = vld [vmem:[#allocation3 + $0x178] sm:$0xff]  }
  0x27   :  { %891 = vmatprep.subr.bf16.mxu1 %v971_v21  ;;  %v1007_v1 = vld [vmem:[#allocation3 + $0x1f0] sm:$0xff]   ;;  %v1011_v5 = vld [vmem:[#allocation3 + $0x1f8] sm:$0xff]  }
  0x28   :  { %v1008_v2 = vld [vmem:[#allocation3 + $0x130] sm:$0xff]   ;;  %v1012_v6 = vld [vmem:[#allocation3 + $0x138] sm:$0xff]  }
  0x29   :  { %870 = vmatpush3.bf16.msra.mxu0 %v972_v22  ;;  %v1009_v3 = vld [vmem:[#allocation3 + $0x1b0] sm:$0xff]   ;;  %v1013_v7 = vld [vmem:[#allocation3 + $0x1b8] sm:$0xff]  }
  0x2a   :  { %892 = vmatpush3.bf16.msra.mxu1 %v973_v23  ;;  %871 = vmatprep.subr.bf16.mxu0 %v974_v24  ;;  %v39_v8 = vld [vmem:[%s1106_s0 + $0x10] sm:$0xff]  ;;  %v40_v12 = vld [vmem:[%s1106_s0 + $0x18] sm:$0xff] }
  0x2b   :  { %893 = vmatprep.subr.bf16.mxu1 %v975_v25  ;;  %v43_v9 = vld [vmem:[%s1106_s0 + $0x30] sm:$0xff]  ;;  %v44_v13 = vld [vmem:[%s1106_s0 + $0x38] sm:$0xff] }
  0x2c   :  { %v790_v10 = vcombine.low %v39_v8, %v43_v9  ;;  %v791_v11 = vcombine.high %v39_v8, %v43_v9  ;;  %v792_v14 = vcombine.low %v40_v12, %v44_v13  ;;  %v793_v15 = vcombine.high %v40_v12, %v44_v13 }
  0x2d   :  { %872 = vmatpush3.bf16.msra.mxu0 %v976_v26 }
  0x2e   :  { %894 = vmatpush3.bf16.msra.mxu1 %v977_v27  ;;  %873 = vmatprep.subr.bf16.mxu0 %v978_v28 }
  0x2f   :  { %895 = vmatprep.subr.bf16.mxu1 %v979_v29 }
  0x31   :  { %874 = vmatpush3.bf16.msra.mxu0 %v980_v30 }
  0x32   :  { %896 = vmatpush3.bf16.msra.mxu1 %v981_v31  ;;  %903 = vmatprep.subr.bf16.mxu0 %v982_v40 }
  0x33   :  { %925 = vmatprep.subr.bf16.mxu1 %v983_v41 }
  0x34   :  { %630 = vmatmul.mubr.bf16.vlgmr.msra.gmra.mrb[0].mxu0 %v786_v35 }
  0x35   :  { %671 = vmatmul.mubr.bf16.vlgmr.msra.gmra.mrb[0].mxu1 %v788_v38  ;;  %904 = vmatpush3.bf16.msra.mxu0 %v984_v42  ;;  %v858_v42 = vld [vmem:[%s1108_s2] ss:$0 sm:$0xff] }
  0x36   :  { %926 = vmatpush3.bf16.msra.mxu1 %v985_v43  ;;  %905 = vmatprep.subr.bf16.mxu0 %v986_v44 }
  0x37   :  { %927 = vmatprep.subr.bf16.mxu1 %v987_v45  ;;  %711 = vmatprep.mubr.bf16.mxu0 %v791_v11 }
  0x38   :  { %752 = vmatprep.mubr.bf16.mxu1 %v793_v15 }
  0x39   :  { %906 = vmatpush3.bf16.msra.mxu0 %v988_v46 }
  0x3a   :  { %928 = vmatpush3.bf16.msra.mxu1 %v989_v47  ;;  %907 = vmatprep.subr.bf16.mxu0 %v990_v48 }
  0x3b   :  { %929 = vmatprep.subr.bf16.mxu1 %v991_v49 }
  0x3d   :  { %908 = vmatpush3.bf16.msra.mxu0 %v992_v50 }
  0x3e   :  { %930 = vmatpush3.bf16.msra.mxu1 %v993_v51  ;;  %909 = vmatprep.subr.bf16.mxu0 %v994_v52 }
  0x3f   :  { %931 = vmatprep.subr.bf16.mxu1 %v995_v53 }
  0x41   :  { %910 = vmatpush3.bf16.msra.mxu0 %v996_v54 }
  0x42   :  { %932 = vmatpush3.bf16.msra.mxu1 %v997_v55  ;;  %911 = vmatprep.subr.bf16.mxu0 %v998_v56 }
  0x43   :  { %933 = vmatprep.subr.bf16.mxu1 %v999_v57 }
  0x45   :  { %912 = vmatpush3.bf16.msra.mxu0 %v1000_v58 }
  0x46   :  { %934 = vmatpush3.bf16.msra.mxu1 %v1001_v59  ;;  %913 = vmatprep.subr.bf16.mxu0 %v1002_v60 }
  0x47   :  { %935 = vmatprep.subr.bf16.mxu1 %v1003_v61 }
  0x49   :  { %914 = vmatpush3.bf16.msra.mxu0 %v1004_v62 }
  0x4a   :  { %936 = vmatpush3.bf16.msra.mxu1 %v1005_v63  ;;  %915 = vmatprep.subr.bf16.mxu0 %v1006_v0 }
  0x4b   :  { %937 = vmatprep.subr.bf16.mxu1 %v1007_v1 }
  0x4d   :  { %916 = vmatpush3.bf16.msra.mxu0 %v1008_v2 }
  0x4e   :  { %938 = vmatpush3.bf16.msra.mxu1 %v1009_v3  ;;  %917 = vmatprep.subr.bf16.mxu0 %v1010_v4 }
  0x4f   :  { %939 = vmatprep.subr.bf16.mxu1 %v1011_v5 }
  0x51   :  { %918 = vmatpush3.bf16.msra.mxu0 %v1012_v6 }
  0x52   :  { %940 = vmatpush3.bf16.msra.mxu1 %v1013_v7 }
  0x54   :  { %712 = vmatmul.mubr.bf16.vlgmr.msra.gmra.mrb[4].mxu0 %v790_v10 }
  0x55   :  { %753 = vmatmul.mubr.bf16.vlgmr.msra.gmra.mrb[4].mxu1 %v792_v14 }
 0x107   :  { %v875_v16 = vpop.f32.mrb[0].mxu0 }
 0x108   :  { %v897_v17 = vpop.f32.mrb[0].mxu1  ;;  %v876_v18 = vpop.f32.mrb[1].mxu0 }
 0x109   :  { %v877_v19 = vadd.f32 %v876_v18, %v875_v16  ;;  %v898_v20 = vpop.f32.mrb[1].mxu1  ;;  %v878_v21 = vpop.f32.mrb[2].mxu0 }
 0x10a   :  { %v899_v22 = vadd.f32 %v898_v20, %v897_v17  ;;  %v900_v23 = vpop.f32.mrb[2].mxu1  ;;  %v879_v24 = vpop.f32.mrb[3].mxu0 }
 0x10b   :  { %v880_v25 = vadd.f32 %v879_v24, %v878_v21  ;;  %v901_v26 = vpop.f32.mrb[3].mxu1 }
 0x10c   :  { %v673_v27 = vadd.f32 %v899_v22, %v877_v19  ;;  %v902_v28 = vadd.f32 %v901_v26, %v900_v23 }
 0x10e   :  { %v676_v29 = vadd.f32 %v902_v28, %v880_v25 }
 0x127   :  { %v919_v30 = vpop.f32.mrb[4].mxu0 }
 0x128   :  { %v941_v31 = vpop.f32.mrb[4].mxu1  ;;  %v920_v32 = vpop.f32.mrb[5].mxu0 }
 0x129   :  { %v921_v33 = vadd.f32 %v920_v32, %v919_v30  ;;  %v942_v34 = vpop.f32.mrb[5].mxu1  ;;  %v922_v35 = vpop.f32.mrb[6].mxu0 }
 0x12a   :  { %v943_v36 = vadd.f32 %v942_v34, %v941_v31  ;;  %v944_v37 = vpop.f32.mrb[6].mxu1  ;;  %v923_v38 = vpop.f32.mrb[7].mxu0 }
 0x12b   :  { %v714_v39 = vadd.f32 %v921_v33, %v673_v27  ;;  %v924_v40 = vadd.f32 %v923_v38, %v922_v35  ;;  %v945_v41 = vpop.f32.mrb[7].mxu1 }
 0x12c   :  { %v946_v43 = vadd.f32 %v945_v41, %v944_v37 }
 0x12d   :  { %v755_v44 = vadd.f32 %v943_v36, %v714_v39  ;;  %v717_v45 = vadd.f32 %v924_v40, %v676_v29 }
 0x12f   :  { %v777_v46 = vadd.f32 %v858_v42, %v755_v44  ;;  %v758_v47 = vadd.f32 %v946_v43, %v717_v45 }
 0x131   :  { %779 = vst [vmem:[%s1109_s3] sm:$0xff] %v777_v46  ;;  %v778_v48 = vadd.f32 %v858_v42, %v758_v47 }
 0x133   :  { %780 = vst [vmem:[%s1109_s3 + $0x8] sm:$0xff] %v778_v48 }
 0x134   :  { %785 = vsyncpa [#allocation4], 1 }

</bundles_post_ra>
